<compile_context>
chip_gen: v6e
topology: v6e:2x2x1
jax: 0.10.0
libtpu: 0.0.40
codegen_flags: <defaults>
</compile_context>

<pallas_src>
import functools

import jax
import jax.numpy as jnp
from jax.experimental import pallas as pl
from jax.experimental.pallas import tpu as pltpu


# --------------------------------------------------------------------------
# Exact (erf) GELU from Mosaic-safe primitives.
# --------------------------------------------------------------------------
_ERF_P = 0.3275911
_ERF_A1 = 0.254829592
_ERF_A2 = -0.284496736
_ERF_A3 = 1.421413741
_ERF_A4 = -1.453152027
_ERF_A5 = 1.061405429
_INV_SQRT2 = 0.7071067811865476


def _erf_approx(x):
    """Abramowitz & Stegun 7.1.26, |err| <= 1.5e-7 (f32), elementwise ops only."""
    ax = jnp.abs(x)
    t = 1.0 / (1.0 + _ERF_P * ax)
    poly = ((((_ERF_A5 * t + _ERF_A4) * t + _ERF_A3) * t + _ERF_A2) * t + _ERF_A1) * t
    y = 1.0 - poly * jnp.exp(-(ax * ax))
    return jnp.where(x < 0.0, -y, y)


def _gelu_exact(x):
    """Exact (erf-based) GELU, matching torch.nn.functional.gelu defaults."""
    return 0.5 * x * (1.0 + _erf_approx(x * _INV_SQRT2))


# --------------------------------------------------------------------------
# Kernel
# --------------------------------------------------------------------------
def _intermediate_kernel(x_ref, w_ref, b_ref, o_ref, *, sub_n):
    """x_ref: (tm, K)  w_ref: (K, n_block)  b_ref: (1, n_block)  o_ref: (tm, n_block).

    The N block is processed in `sub_n`-wide sub-tiles (unrolled) so the MXU
    matmul of the next sub-tile overlaps the VALU/EUP GELU epilogue of the
    previous one.
    """
    x = x_ref[...]
    n_block = o_ref.shape[-1]
    for s0 in range(0, n_block, sub_n):
        sl = slice(s0, s0 + sub_n)
        y = jnp.dot(x, w_ref[:, sl], preferred_element_type=jnp.float32)
        y = y + b_ref[:, sl].astype(jnp.float32)
        o_ref[:, sl] = _gelu_exact(y).astype(o_ref.dtype)


# --------------------------------------------------------------------------
# Wrappers
# --------------------------------------------------------------------------
def _round_up(x, m):
    return ((x + m - 1) // m) * m


def _pick_sub_n(n_block):
    """Largest lane-aligned sub-tile that yields >= 2 sub-tiles, else whole block."""
    for cand in (512, 256, 128):
        if n_block % cand == 0 and n_block // cand >= 2:
            return cand
    return n_block


def prepare_swin_intermediate_params(weight, bias, compute_dtype=None):
    """One-time parameter prep (outside the per-token path).

    weight: [intermediate, dim] (PyTorch layout) -> returns ([dim, intermediate], [1, intermediate]).
    Optionally cast both to `compute_dtype` (e.g. bf16 on v5e, where the MXU
    has no fast f32 path).
    """
    w_t = jnp.asarray(weight).T                      # [K, N], materialized once
    b2d = jnp.asarray(bias).reshape(1, -1)           # [1, N]
    if compute_dtype is not None:
        w_t = w_t.astype(compute_dtype)
        b2d = b2d.astype(compute_dtype)
    return w_t, b2d


# Weight blocks up to this size are held fully VMEM-resident (largest Swin
# weight, 768x3072 f32, is ~9.4 MiB).
_WEIGHT_RESIDENT_BYTES = 12 * 1024 * 1024


@functools.partial(jax.jit, static_argnames=("tm", "tn"))
def swin_intermediate(hidden_states, w_t, bias2d, *, tm=256, tn=512):
    """hidden_states: [B, S, dim];  w_t: [dim, intermediate];  bias2d: [1, intermediate]."""
    B, S, K = hidden_states.shape
    Kw, N = w_t.shape
    assert Kw == K, "weight in-features must match hidden dim"
    M = B * S
    x2d = hidden_states.reshape(M, K)

    x_item = jnp.dtype(hidden_states.dtype).itemsize
    w_item = jnp.dtype(w_t.dtype).itemsize
    b_item = jnp.dtype(bias2d.dtype).itemsize

    tm_eff = min(tm, _round_up(M, 8))
    weight_resident = (K * N * w_item) <= _WEIGHT_RESIDENT_BYTES

    if weight_resident:
        # Grid only over tokens; W + bias DMA'd once (constant block index).
        grid = (pl.cdiv(M, tm_eff),)
        sub_n = _pick_sub_n(N)
        in_specs = [
            pl.BlockSpec((tm_eff, K), lambda i: (i, 0)),   # x tile
            pl.BlockSpec((K, N), lambda i: (0, 0)),        # resident W^T
            pl.BlockSpec((1, N), lambda i: (0, 0)),        # resident bias
        ]
        out_specs = pl.BlockSpec((tm_eff, N), lambda i: (i, 0))
        dims = ("parallel",)
        w_streams = 1
    else:
        # Fallback for weights too large to hold resident: tile N as well.
        tn_eff = min(tn, _round_up(N, 128))
        grid = (pl.cdiv(M, tm_eff), pl.cdiv(N, tn_eff))
        sub_n = _pick_sub_n(tn_eff)
        in_specs = [
            pl.BlockSpec((tm_eff, K), lambda i, j: (i, 0)),
            pl.BlockSpec((K, tn_eff), lambda i, j: (0, j)),
            pl.BlockSpec((1, tn_eff), lambda i, j: (0, j)),
        ]
        out_specs = pl.BlockSpec((tm_eff, tn_eff), lambda i, j: (i, j))
        dims = ("parallel", "parallel")
        w_streams = pl.cdiv(M, tm_eff)

    kernel = functools.partial(_intermediate_kernel, sub_n=sub_n)

    cost = pl.CostEstimate(
        flops=2 * M * N * K,
        transcendentals=M * N,                       # one exp per output element
        bytes_accessed=(M * K * x_item
                        + K * N * w_item * w_streams
                        + N * b_item
                        + M * N * x_item),
    )

    out2d = pl.pallas_call(
        kernel,
        out_shape=jax.ShapeDtypeStruct((M, N), hidden_states.dtype),
        grid_spec=pltpu.PrefetchScalarGridSpec(
            num_scalar_prefetch=0,
            grid=grid,
            in_specs=in_specs,
            out_specs=out_specs,
        ),
        compiler_params=pltpu.CompilerParams(
            dimension_semantics=dims,
            vmem_limit_bytes=48 * 1024 * 1024,
        ),
        cost_estimate=cost,
    )(x2d, w_t, bias2d)

    return out2d.reshape(B, S, N)


# --------------------------------------------------------------------------
# Reference + test
# --------------------------------------------------------------------------
def _reference(hidden_states, weight, bias):
    y = jnp.einsum(
        "bsd,nd->bsn", hidden_states, weight,
        preferred_element_type=jnp.float32,
        precision=jax.lax.Precision.HIGHEST,
    ) + bias.astype(jnp.float32)
    return jax.nn.gelu(y, approximate=False).astype(hidden_states.dtype)


def _run_case(key, B, S, dim, intermediate, dtype=jnp.float32):
    kx, kw, kb = jax.random.split(key, 3)
    x = jax.random.normal(kx, (B, S, dim), dtype=jnp.float32)
    w = jax.random.normal(kw, (intermediate, dim), dtype=jnp.float32) * 0.02
    b = jax.random.normal(kb, (intermediate,), dtype=jnp.float32) * 0.02

    # Snap x / W to bf16-representable values so the comparison is insensitive
    # to which bf16-pass mode the MXU uses for the f32 matmul.
    x = x.astype(jnp.bfloat16).astype(dtype)
    w = w.astype(jnp.bfloat16).astype(dtype)
    b = b.astype(dtype)

    w_t, b2d = prepare_swin_intermediate_params(w, b)   # one-time prep
    out = swin_intermediate(x, w_t, b2d)
    out = jax.block_until_ready(out)

    ref = _reference(x, w, b)
    assert out.shape == (B, S, intermediate), out.shape
    err = float(jnp.max(jnp.abs(out.astype(jnp.float32) - ref.astype(jnp.float32))))
    assert err < 2e-4, f"max abs err {err}"
    return err


if __name__ == "__main__":
    key = jax.random.PRNGKey(0)
    k0, k1 = jax.random.split(key)

    # Small toy shape (nicely divisible): dim -> 4*dim.
    _run_case(k0, B=2, S=64, dim=32, intermediate=128)

    # Swin-realistic odd shape: window_size=7 -> S=49, dim=96, mlp_ratio=4
    # (exercises the masked partial-edge-block path: M = 147 tokens).
    _run_case(k1, B=3, S=49, dim=96, intermediate=384)

    print("KERNEL_OK")
</pallas_src>

<mosaic_0001>
module attributes {stable_mosaic.version = 11 : i64} {
  func.func @_intermediate_kernel(%arg0: i32, %arg1: memref<128x32xf32, #tpu.memory_space<vmem>>, %arg2: memref<32x128xf32, #tpu.memory_space<vmem>>, %arg3: memref<1x128xf32, #tpu.memory_space<vmem>>, %arg4: memref<128x128xf32, #tpu.memory_space<vmem>>) attributes {dimension_semantics = [#tpu.dimension_semantics<parallel>], iteration_bounds = array<i64: 1>, scalar_prefetch = 0 : i64, scratch_operands = 0 : i64, tpu.core_type = #tpu.core_type<tc>, window_params = [{transform_indices = @transform_0, window_bounds = array<i64: 128, 32>}, {pipeline_mode = #tpu.pipeline_mode<synchronous>, transform_indices = @transform_1, window_bounds = array<i64: 32, 128>}, {pipeline_mode = #tpu.pipeline_mode<synchronous>, transform_indices = @transform_2, window_bounds = array<i64: 1, 128>}, {transform_indices = @transform_3, window_bounds = array<i64: 128, 128>}]} {
    %c0 = arith.constant 0 : index
    %c0_0 = arith.constant 0 : index
    %0 = vector.load %arg1[%c0, %c0_0] : memref<128x32xf32, #tpu.memory_space<vmem>>, vector<128x32xf32>
    %c0_1 = arith.constant 0 : index
    %c0_2 = arith.constant 0 : index
    %1 = vector.load %arg2[%c0_1, %c0_2] : memref<32x128xf32, #tpu.memory_space<vmem>>, vector<32x128xf32>
    %cst = arith.constant dense<0.000000e+00> : vector<128x128xf32>
    %2 = tpu.matmul %0, %1, %cst {dimension_numbers = #tpu.dot_dimension_numbers<[1], [0], [0], [1], [0, 0, 1, 1], [], []>} : vector<128x32xf32>, vector<32x128xf32>, vector<128x128xf32> -> vector<128x128xf32>
    %c0_3 = arith.constant 0 : index
    %c0_4 = arith.constant 0 : index
    %3 = vector.load %arg3[%c0_3, %c0_4] : memref<1x128xf32, #tpu.memory_space<vmem>>, vector<1x128xf32>
    %4 = vector.broadcast %3 : vector<1x128xf32> to vector<128x128xf32>
    %5 = arith.addf %2, %4 : vector<128x128xf32>
    %cst_5 = arith.constant 5.000000e-01 : f32
    %6 = vector.broadcast %cst_5 : f32 to vector<128x128xf32>
    %7 = arith.mulf %6, %5 : vector<128x128xf32>
    %cst_6 = arith.constant 0.707106769 : f32
    %8 = vector.broadcast %cst_6 : f32 to vector<128x128xf32>
    %9 = arith.mulf %5, %8 : vector<128x128xf32>
    %10 = math.absf %9 : vector<128x128xf32>
    %cst_7 = arith.constant 0.327591091 : f32
    %11 = vector.broadcast %cst_7 : f32 to vector<128x128xf32>
    %12 = arith.mulf %11, %10 : vector<128x128xf32>
    %cst_8 = arith.constant 1.000000e+00 : f32
    %13 = vector.broadcast %cst_8 : f32 to vector<128x128xf32>
    %14 = arith.addf %13, %12 : vector<128x128xf32>
    %cst_9 = arith.constant 1.000000e+00 : f32
    %15 = vector.broadcast %cst_9 : f32 to vector<128x128xf32>
    %16 = arith.divf %15, %14 : vector<128x128xf32>
    %cst_10 = arith.constant 1.06140542 : f32
    %17 = vector.broadcast %cst_10 : f32 to vector<128x128xf32>
    %18 = arith.mulf %17, %16 : vector<128x128xf32>
    %cst_11 = arith.constant -1.45315206 : f32
    %19 = vector.broadcast %cst_11 : f32 to vector<128x128xf32>
    %20 = arith.addf %18, %19 : vector<128x128xf32>
    %21 = arith.mulf %20, %16 : vector<128x128xf32>
    %cst_12 = arith.constant 1.42141378 : f32
    %22 = vector.broadcast %cst_12 : f32 to vector<128x128xf32>
    %23 = arith.addf %21, %22 : vector<128x128xf32>
    %24 = arith.mulf %23, %16 : vector<128x128xf32>
    %cst_13 = arith.constant -0.284496725 : f32
    %25 = vector.broadcast %cst_13 : f32 to vector<128x128xf32>
    %26 = arith.addf %24, %25 : vector<128x128xf32>
    %27 = arith.mulf %26, %16 : vector<128x128xf32>
    %cst_14 = arith.constant 0.254829586 : f32
    %28 = vector.broadcast %cst_14 : f32 to vector<128x128xf32>
    %29 = arith.addf %27, %28 : vector<128x128xf32>
    %30 = arith.mulf %29, %16 : vector<128x128xf32>
    %31 = arith.mulf %10, %10 : vector<128x128xf32>
    %cst_15 = arith.constant 0.000000e+00 : f32
    %32 = vector.broadcast %cst_15 : f32 to vector<128x128xf32>
    %33 = arith.subf %32, %31 : vector<128x128xf32>
    %34 = math.exp %33 : vector<128x128xf32>
    %35 = arith.mulf %30, %34 : vector<128x128xf32>
    %cst_16 = arith.constant 1.000000e+00 : f32
    %36 = vector.broadcast %cst_16 : f32 to vector<128x128xf32>
    %37 = arith.subf %36, %35 : vector<128x128xf32>
    %cst_17 = arith.constant 0.000000e+00 : f32
    %38 = vector.broadcast %cst_17 : f32 to vector<128x128xf32>
    %39 = arith.cmpf olt, %9, %38 : vector<128x128xf32>
    %cst_18 = arith.constant 0.000000e+00 : f32
    %40 = vector.broadcast %cst_18 : f32 to vector<128x128xf32>
    %41 = arith.subf %40, %37 : vector<128x128xf32>
    %42 = arith.select %39, %41, %37 : vector<128x128xi1>, vector<128x128xf32>
    %cst_19 = arith.constant 1.000000e+00 : f32
    %43 = vector.broadcast %cst_19 : f32 to vector<128x128xf32>
    %44 = arith.addf %43, %42 : vector<128x128xf32>
    %45 = arith.mulf %7, %44 : vector<128x128xf32>
    %c0_20 = arith.constant 0 : index
    %c0_21 = arith.constant 0 : index
    %46 = vector.load %arg4[%c0_20, %c0_21] : memref<128x128xf32, #tpu.memory_space<vmem>>, vector<128x128xf32>
    tpu.vector_store %arg4[%c0_20, %c0_21], %45 {strides = array<i32>} : memref<128x128xf32, #tpu.memory_space<vmem>>, vector<128x128xf32>,
    return
  }
  func.func @transform_0(%arg0: i32) -> (i32, i32) {
    %c0_i32 = arith.constant 0 : i32
    %c0_i32_0 = arith.constant 0 : i32
    return %arg0, %c0_i32 : i32, i32
  }
  func.func @transform_1(%arg0: i32) -> (i32, i32) {
    %c0_i32 = arith.constant 0 : i32
    %c0_i32_0 = arith.constant 0 : i32
    %c0_i32_1 = arith.constant 0 : i32
    return %c0_i32, %c0_i32_0 : i32, i32
  }
  func.func @transform_2(%arg0: i32) -> (i32, i32) {
    %c0_i32 = arith.constant 0 : i32
    %c0_i32_0 = arith.constant 0 : i32
    %c0_i32_1 = arith.constant 0 : i32
    return %c0_i32, %c0_i32_0 : i32, i32
  }
  func.func @transform_3(%arg0: i32) -> (i32, i32) {
    %c0_i32 = arith.constant 0 : i32
    %c0_i32_0 = arith.constant 0 : i32
    return %arg0, %c0_i32 : i32, i32
  }
}

</mosaic_0001>

<bundles_post_ra>
// kernel: swin_intermediate.1
= control target key start
LH: loop header
LB: loop body
LE: loop exit
PB: predicated region body
PF: predicated region fallthrough
CT: control target
= control target key end

     0   :  { %vm42_vm0 = vcmask 261120   ;;  %s1251_s0 = inlined_call_operand.vmem [shape: f32[128,32], index: 0, kind: input, shape index: {}]   ;;  %s1252_s1 = inlined_call_operand.vmem [shape: f32[32,128], index: 1, kind: input, shape index: {}]   ;;  %s1253_s2 = inlined_call_operand.vmem [shape: f32[1,128], index: 2, kind: input, shape index: {}]   ;;  %s1254_s3 = inlined_call_operand.hbm [shape: f32[128,128], index: 3, kind: output, shape index: {}]  }
   0x1   :  { %v34_v0 = vld [vmem:[%s1252_s1 + $0x18] sm:$0xff]  ;;  %v33_v1 = vld [vmem:[%s1252_s1 + $0x10] sm:$0xff]  ;;  %v32_v2 = vld [vmem:[%s1252_s1 + $0x8] sm:$0xff] }
   0x2   :  { %737 = vmatprep.subr.mxu0 %v34_v0  ;;  %769 = vmatprep.subr.mxu1 %v34_v0  ;;  %v31_v3 = vld [vmem:[%s1252_s1] sm:$0xff] }
   0x3   :  { %738 = vmatpush3.msra.mxu0 %v34_v0  ;;  %773 = vmatpush3.msra.mxu1 %v34_v0  ;;  %v15_v4 = vld [vmem:[%s1251_s0] sm:$0xff] }
   0x4   :  { %739 = vmatprep.subr.mxu0 %v33_v1  ;;  %770 = vmatprep.subr.mxu1 %v33_v1  ;;  %v23_v5 = vld [vmem:[%s1251_s0 + $0x40] sm:$0xff] }
   0x5   :  { %740 = vmatpush3.msra.mxu0 %v33_v1  ;;  %774 = vmatpush3.msra.mxu1 %v33_v1 }
   0x6   :  { %741 = vmatprep.subr.mxu0 %v32_v2  ;;  %771 = vmatprep.subr.mxu1 %v32_v2 }
   0x7   :  { %742 = vmatpush3.msra.mxu0 %v32_v2  ;;  %775 = vmatpush3.msra.mxu1 %v32_v2 }
   0x8   :  { %8 = vsyncpa [#allocation3], 0  ;;  %743 = vmatprep.subr.mxu0 %v31_v3  ;;  %772 = vmatprep.subr.mxu1 %v31_v3  ;;  %v16_v6 = vld [vmem:[%s1251_s0 + $0x8] sm:$0xff]  ;;  %v17_v8 = vld [vmem:[%s1251_s0 + $0x10] sm:$0xff] }
   0x9   :  { %v24_v7 = vld [vmem:[%s1251_s0 + $0x48] sm:$0xff]  ;;  %744 = vmatpush3.msra.mxu0 %v31_v3  ;;  %776 = vmatpush3.msra.mxu1 %v31_v3  ;;  %v25_v9 = vld [vmem:[%s1251_s0 + $0x50] sm:$0xff]  ;;  %v18_v10 = vld [vmem:[%s1251_s0 + $0x18] sm:$0xff] }
   0xa   :  { %745 = vmatprep.mubr.msk.f32.mxu0 %vm42_vm0, %v15_v4  ;;  %757 = vmatprep.mubr.msk.f32.mxu1 %vm42_vm0, %v23_v5  ;;  %v26_v11 = vld [vmem:[%s1251_s0 + $0x58] sm:$0xff]  ;;  %v19_v12 = vld [vmem:[%s1251_s0 + $0x20] sm:$0xff]  ;;  %v20_v14 = vld [vmem:[%s1251_s0 + $0x28] sm:$0xff] }
   0xb   :  { %746 = vmatmul.mubr.msk.f32.vlgmr.msra.gmra.mxu0 %vm42_vm0, %v16_v6  ;;  %758 = vmatmul.mubr.msk.f32.vlgmr.msra.gmra.mxu1 %vm42_vm0, %v24_v7  ;;  %v27_v13 = vld [vmem:[%s1251_s0 + $0x60] sm:$0xff]  ;;  %v28_v15 = vld [vmem:[%s1251_s0 + $0x68] sm:$0xff]  ;;  %v21_v16 = vld [vmem:[%s1251_s0 + $0x30] sm:$0xff] }
   0xc   :  { %748 = vmatprep.mubr.msk.f32.mxu0 %vm42_vm0, %v17_v8  ;;  %760 = vmatprep.mubr.msk.f32.mxu1 %vm42_vm0, %v25_v9  ;;  %v29_v17 = vld [vmem:[%s1251_s0 + $0x70] sm:$0xff]  ;;  %v22_v18 = vld [vmem:[%s1251_s0 + $0x38] sm:$0xff]  ;;  %v968_v20 = vld [vmem:[%s1253_s2] ss:$0 sm:$0xff] }
   0xd   :  { %v30_v19 = vld [vmem:[%s1251_s0 + $0x78] sm:$0xff]  ;;  %s866_s0 = smov [#allocation2]  }
   0xe   :  { %s689_s2 = sshll.u32 %s866_s0, 4  ;;  %s690_s2 = int_to_ptr.vmem [resolvable:$true] %s689_s2 }
   0xf   :  { %749 = vmatmul.mubr.msk.f32.gmra.mxu0 %vm42_vm0, %v18_v10  ;;  %761 = vmatmul.mubr.msk.f32.gmra.mxu1 %vm42_vm0, %v26_v11  ;;  %s844_s1 = scalar_lea.vmem %s690_s2, 2048  ;;  %p849_p1 = scmp.lt.s32.totalorder %s690_s2, %s690_s2 }
  0x10   :  { %751 = vmatprep.mubr.msk.f32.mxu0 %vm42_vm0, %v19_v12  ;;  %763 = vmatprep.mubr.msk.f32.mxu1 %vm42_vm0, %v27_v13  ;;  %p845_p0 = scmp.ne.s32.totalorder %s690_s2, %s844_s1  ;;  %p850_p2 = scmp.lt.s32.totalorder %s844_s1, %s844_s1 }
  0x12   :  { %p851_p3 = por %p850_p2, %p849_p1 }
  0x13   :  { %752 = vmatmul.mubr.msk.f32.gmra.mxu0 %vm42_vm0, %v20_v14  ;;  %764 = vmatmul.mubr.msk.f32.gmra.mxu1 %vm42_vm0, %v28_v15 }
  0x14   :  { %754 = vmatprep.mubr.msk.f32.mxu0 %vm42_vm0, %v21_v16  ;;  %766 = vmatprep.mubr.msk.f32.mxu1 %vm42_vm0, %v29_v17  ;;  %p852_p4 = pnand %p851_p3, %p845_p0 }
  0x17   :  { %755 = vmatmul.mubr.msk.f32.gmra.mxu0 %vm42_vm0, %v22_v18  ;;  %767 = vmatmul.mubr.msk.f32.gmra.mxu1 %vm42_vm0, %v30_v19 }
  0xcb   :  { %v747_v21 = vpop.f32.mrf.mxu0  ;;  %v759_v22 = vpop.f32.mrf.mxu1 }
  0xcc   :  { %v163_v23 = vadd.f32 %v747_v21, %v968_v20  ;;  %v203_v24 = vadd.f32 %v759_v22, %v968_v20 }
  0xcd   :  { %v157_v25 = vpop.f32.mrf.mxu0  ;;  %v197_v26 = vpop.f32.mrf.mxu1 }
  0xce   :  { %v972_v27 = vmul.f32 0.70710677, %v163_v23  ;;  %v974_v28 = vmul.f32 0.70710677, %v203_v24  ;;  %v158_v29 = vadd.f32 %v968_v20, %v157_v25  ;;  %v198_v30 = vadd.f32 %v968_v20, %v197_v26 }
  0xcf   :  { %v750_v39 = vpop.f32.mrf.mxu0  ;;  %v762_v51 = vpop.f32.mrf.mxu1  ;;  %v993_v61 = vmul.f32 0.5, %v163_v23  ;;  %v996_v1 = vmul.f32 0.5, %v203_v24 }
  0xd0   :  { %v269_v31 = vand.u32 2147483647, %v972_v27  ;;  %v277_v32 = vand.u32 2147483647, %v974_v28  ;;  %v980_v33 = vmul.f32 0.70710677, %v158_v29  ;;  %v173_v50 = vadd.f32 %v750_v39, %v968_v20 }
  0xd1   :  { %v982_v34 = vmul.f32 0.70710677, %v198_v30  ;;  %v167_v52 = vpop.f32.mrf.mxu0  ;;  %v213_v59 = vadd.f32 %v762_v51, %v968_v20  ;;  %v207_v0 = vpop.f32.mrf.mxu1  ;;  %v1003_v7 = vmul.f32 0.5, %v158_v29  ;;  %v1013_v18 = vmul.f32 0.5, %v198_v30 }
  0xd2   :  { %v285_v35 = vmul.f32 0.3275911, %v269_v31  ;;  %v493_v36 = vmul.f32 %v269_v31, %v269_v31  ;;  %v293_v37 = vmul.f32 0.3275911, %v277_v32  ;;  %v501_v38 = vmul.f32 %v277_v32, %v277_v32 }
  0xd3   :  { %v268_v40 = vand.u32 2147483647, %v980_v33  ;;  %v276_v41 = vand.u32 2147483647, %v982_v34  ;;  %v987_v57 = vmul.f32 0.70710677, %v173_v50  ;;  %v991_v60 = vadd.f32 %v968_v20, %v167_v52  ;;  %v753_v17 = vpop.f32.mrf.mxu0 }
  0xd4   :  { %v301_v42 = vadd.f32 1.0, %v285_v35  ;;  %v509_v43 = vsub.f32 0.0, %v493_v36  ;;  %v309_v44 = vadd.f32 1.0, %v293_v37  ;;  %v517_v45 = vsub.f32 0.0, %v501_v38  ;;  %v765_v37 = vpop.f32.mrf.mxu1 }
  0xd5   :  { %v284_v46 = vmul.f32 0.3275911, %v268_v40  ;;  %v492_v47 = vmul.f32 %v268_v40, %v268_v40  ;;  %v292_v48 = vmul.f32 0.3275911, %v276_v41  ;;  %v500_v49 = vmul.f32 %v276_v41, %v276_v41 }
  0xd6   :  { %780 = vrcp.f32 %v301_v42  ;;  %v526_v53 = vmul.f32 1.442695, %v509_v43  ;;  %v542_v58 = vmul.f32 1.442695, %v517_v45  ;;  %v271_v63 = vand.u32 2147483647, %v987_v57 }
  0xd7   :  { %782 = vrcp.f32 %v309_v44  ;;  %v300_v54 = vadd.f32 1.0, %v284_v46  ;;  %v508_v55 = vsub.f32 0.0, %v492_v47  ;;  %v308_v56 = vadd.f32 1.0, %v292_v48  ;;  %v177_v48 = vpop.f32.mrf.mxu0 }
  0xd8   :  { %v516_v62 = vsub.f32 0.0, %v500_v49  ;;  %v998_v3 = vmul.f32 0.70710677, %v213_v59  ;;  %v287_v4 = vmul.f32 0.3275911, %v271_v63  ;;  %v495_v5 = vmul.f32 %v271_v63, %v271_v63 }
  0xd9   :  { %784 = vrcp.f32 %v300_v54  ;;  %v524_v2 = vmul.f32 1.442695, %v508_v55  ;;  %v1001_v6 = vmul.f32 0.70710677, %v991_v60  ;;  %v1007_v9 = vadd.f32 %v968_v20, %v207_v0 }
  0xda   :  { %786 = vpow2.f32 %v526_v53  ;;  %v279_v8 = vand.u32 2147483647, %v998_v3  ;;  %v540_v10 = vmul.f32 1.442695, %v516_v62  ;;  %v303_v11 = vadd.f32 1.0, %v287_v4 }
  0xdb   :  { %788 = vrcp.f32 %v308_v56  ;;  %v511_v12 = vsub.f32 0.0, %v495_v5  ;;  %v270_v13 = vand.u32 2147483647, %v1001_v6  ;;  %v1011_v16 = vmul.f32 0.70710677, %v1007_v9 }
  0xdc   :  { %790 = vpow2.f32 %v542_v58  ;;  %v295_v14 = vmul.f32 0.3275911, %v279_v8  ;;  %v503_v15 = vmul.f32 %v279_v8, %v279_v8  ;;  %v1017_v31 = vadd.f32 %v753_v17, %v968_v20  ;;  %v217_v58 = vpop.f32.mrf.mxu1 }
  0xdd   :  { %792 = vpow2.f32 %v524_v2  ;;  %v286_v19 = vmul.f32 0.3275911, %v270_v13  ;;  %v494_v21 = vmul.f32 %v270_v13, %v270_v13  ;;  %v530_v22 = vmul.f32 1.442695, %v511_v12 }
  0xde   :  { %794 = vrcp.f32 %v303_v11  ;;  %v311_v23 = vadd.f32 1.0, %v295_v14  ;;  %v519_v24 = vsub.f32 0.0, %v503_v15  ;;  %v278_v25 = vand.u32 2147483647, %v1011_v16 }
  0xdf   :  { %796 = vpow2.f32 %v540_v10  ;;  %v302_v26 = vadd.f32 1.0, %v286_v19  ;;  %v510_v29 = vsub.f32 0.0, %v494_v21  ;;  %v1024_v40 = vmul.f32 0.5, %v173_v50 }
  0xe0   :  { %798 = vrcp.f32 %v311_v23  ;;  %v546_v35 = vmul.f32 1.442695, %v519_v24  ;;  %v294_v30 = vmul.f32 0.3275911, %v278_v25  ;;  %v502_v36 = vmul.f32 %v278_v25, %v278_v25 }
  0xe1   :  { %800 = vrcp.f32 %v302_v26  ;;  %v528_v41 = vmul.f32 1.442695, %v510_v29  ;;  %v1028_v46 = vmul.f32 0.70710677, %v1017_v31  ;;  %v1031_v47 = vadd.f32 %v765_v37, %v968_v20 }
  0xe2   :  { %802 = vpow2.f32 %v530_v22  ;;  %v310_v43 = vadd.f32 1.0, %v294_v30  ;;  %v518_v44 = vsub.f32 0.0, %v502_v36  ;;  %v1035_v51 = vmul.f32 0.5, %v213_v59 }
  0xe3   :  { %v1019_v32 = vpop.eup %780  ;;  %804 = vpow2.f32 %v546_v35  ;;  %v273_v56 = vand.u32 2147483647, %v1028_v46  ;;  %v1046_v59 = vmul.f32 0.70710677, %v1031_v47  ;;  %v1049_v0 = vadd.f32 %v968_v20, %v177_v48 }
  0xe4   :  { %v1021_v38 = vpop.eup %782  ;;  %v349_v39 = vmul.f32 1.0614054, %v1019_v32  ;;  %806 = vrcp.f32 %v310_v43  ;;  %v544_v52 = vmul.f32 1.442695, %v518_v44  ;;  %v1056_v14 = vadd.f32 %v968_v20, %v217_v58 }
  0xe5   :  { %v357_v42 = vmul.f32 1.0614054, %v1021_v38  ;;  %808 = vpow2.f32 %v528_v41  ;;  %v497_v10 = vmul.f32 %v273_v56, %v273_v56  ;;  %v289_v12 = vmul.f32 0.3275911, %v273_v56 }
  0xe6   :  { %v365_v45 = vadd.f32 -1.4531521, %v349_v39  ;;  %v1033_v49 = vpop.eup %784  ;;  %810 = vpow2.f32 %v544_v52  ;;  %v281_v13 = vand.u32 2147483647, %v1046_v59  ;;  %vm589_vm1 = vcmp.lt.f32.partialorder %v972_v27, 0.0 }
  0xe7   :  { %v373_v50 = vadd.f32 -1.4531521, %v357_v42  ;;  %v1037_v53 = vpop.eup %786  ;;  %v348_v55 = vmul.f32 1.0614054, %v1033_v49  ;;  %v513_v22 = vsub.f32 0.0, %v497_v10  ;;  %v305_v25 = vadd.f32 1.0, %v289_v12 }
  0xe8   :  { %v381_v54 = vmul.f32 %v1019_v32, %v365_v45  ;;  %v1042_v62 = vpop.eup %788  ;;  %v297_v26 = vmul.f32 0.3275911, %v281_v13  ;;  %v1065_v29 = vmul.f32 %v281_v13, %v281_v13  ;;  %vm597_vm2 = vcmp.lt.f32.partialorder %v974_v28, 0.0 }
  0xe9   :  { %v389_v63 = vmul.f32 %v1021_v38, %v373_v50  ;;  %v1051_v2 = vpop.eup %790  ;;  %v364_v5 = vadd.f32 -1.4531521, %v348_v55  ;;  %v356_v8 = vmul.f32 1.0614054, %v1042_v62  ;;  %812 = vrcp.f32 %v305_v25 }
  0xea   :  { %v397_v4 = vadd.f32 1.4214138, %v381_v54  ;;  %v1058_v15 = vpop.eup %792  ;;  %v534_v42 = vmul.f32 1.442695, %v513_v22  ;;  %v313_v43 = vadd.f32 1.0, %v297_v26  ;;  %v521_v58 = vsub.f32 0.0, %v1065_v29 }
  0xeb   :  { %v405_v11 = vadd.f32 1.4214138, %v389_v63  ;;  %v380_v19 = vmul.f32 %v1033_v49, %v364_v5  ;;  %v372_v21 = vadd.f32 -1.4531521, %v356_v8  ;;  %v1062_v23 = vpop.eup %794  ;;  %vm588_vm3 = vcmp.lt.f32.partialorder %v980_v33, 0.0 }
  0xec   :  { %v413_v17 = vmul.f32 %v1019_v32, %v397_v4  ;;  %v351_v37 = vmul.f32 1.0614054, %v1062_v23  ;;  %v1069_v39 = vpop.eup %796  ;;  %814 = vpow2.f32 %v534_v42  ;;  %vm596_vm4 = vcmp.lt.f32.partialorder %v982_v34, 0.0 }
  0xed   :  { %v421_v24 = vmul.f32 %v1021_v38, %v405_v11  ;;  %v396_v30 = vadd.f32 1.4214138, %v380_v19  ;;  %v388_v36 = vmul.f32 %v1042_v62, %v372_v21  ;;  %v1071_v44 = vpop.eup %798  ;;  %816 = vrcp.f32 %v313_v43 }
  0xee   :  { %v429_v35 = vadd.f32 -0.28449672, %v413_v17  ;;  %v367_v52 = vadd.f32 -1.4531521, %v351_v37  ;;  %v1075_v54 = vpop.eup %800  ;;  %v359_v56 = vmul.f32 1.0614054, %v1071_v44 }
  0xef   :  { %v437_v41 = vadd.f32 -0.28449672, %v421_v24  ;;  %v412_v48 = vmul.f32 %v1033_v49, %v396_v30  ;;  %v404_v50 = vadd.f32 1.4214138, %v388_v36  ;;  %v1080_v63 = vpop.eup %802  ;;  %v350_v17 = vmul.f32 1.0614054, %v1075_v54 }
  0xf0   :  { %v445_v45 = vmul.f32 %v1019_v32, %v429_v35  ;;  %v383_v10 = vmul.f32 %v1062_v23, %v367_v52  ;;  %v1084_v11 = vpop.eup %804  ;;  %v375_v13 = vadd.f32 -1.4531521, %v359_v56  ;;  %vm591_vm5 = vcmp.lt.f32.partialorder %v987_v57, 0.0 }
  0xf1   :  { %v453_v55 = vmul.f32 %v1021_v38, %v437_v41  ;;  %v428_v5 = vadd.f32 -0.28449672, %v412_v48  ;;  %v420_v8 = vmul.f32 %v1042_v62, %v404_v50  ;;  %v1088_v19 = vpop.eup %806  ;;  %v366_v36 = vadd.f32 -1.4531521, %v350_v17 }
  0xf2   :  { %v461_v4 = vadd.f32 0.2548296, %v445_v45  ;;  %v399_v25 = vadd.f32 1.4214138, %v383_v10  ;;  %v1093_v26 = vpop.eup %808  ;;  %v391_v30 = vmul.f32 %v1071_v44, %v375_v13  ;;  %v358_v37 = vmul.f32 1.0614054, %v1088_v19 }
  0xf3   :  { %v469_v12 = vadd.f32 0.2548296, %v453_v55  ;;  %v444_v22 = vmul.f32 %v1033_v49, %v428_v5  ;;  %v436_v24 = vadd.f32 -0.28449672, %v420_v8  ;;  %v1098_v41 = vpop.eup %810  ;;  %vm599_vm6 = vcmp.lt.f32.partialorder %v998_v3, 0.0 }
  0xf4   :  { %v477_v21 = vmul.f32 %v1019_v32, %v461_v4  ;;  %v415_v45 = vmul.f32 %v1062_v23, %v399_v25  ;;  %v407_v50 = vadd.f32 1.4214138, %v391_v30  ;;  %v374_v52 = vadd.f32 -1.4531521, %v358_v37 }
  0xf5   :  { %v485_v35 = vmul.f32 %v1021_v38, %v469_v12  ;;  %v460_v32 = vadd.f32 0.2548296, %v444_v22  ;;  %v452_v43 = vmul.f32 %v1042_v62, %v436_v24  ;;  %v382_v38 = vmul.f32 %v1075_v54, %v366_v36 }
  0xf6   :  { %v557_v42 = vmul.f32 %v1037_v53, %v477_v21  ;;  %v431_v5 = vadd.f32 -0.28449672, %v415_v45  ;;  %v423_v53 = vmul.f32 %v1071_v44, %v407_v50  ;;  %v390_v12 = vmul.f32 %v1088_v19, %v374_v52 }
  0xf7   :  { %v565_v48 = vmul.f32 %v1051_v2, %v485_v35  ;;  %v476_v56 = vmul.f32 %v1033_v49, %v460_v32  ;;  %v468_v4 = vadd.f32 0.2548296, %v452_v43  ;;  %v398_v10 = vadd.f32 1.4214138, %v382_v38  ;;  %v1114_v35 = vpop.eup %812 }
  0xf8   :  { %v573_v55 = vsub.f32 1.0, %v557_v42  ;;  %v447_v21 = vmul.f32 %v1062_v23, %v431_v5  ;;  %v439_v24 = vadd.f32 -0.28449672, %v423_v53  ;;  %v406_v25 = vadd.f32 1.4214138, %v390_v12 }
  0xf9   :  { %v581_v8 = vsub.f32 1.0, %v565_v48  ;;  %v556_v13 = vmul.f32 %v1058_v15, %v476_v56  ;;  %v484_v17 = vmul.f32 %v1042_v62, %v468_v4  ;;  %v414_v49 = vmul.f32 %v1075_v54, %v398_v10  ;;  %v1123_v45 = vpop.eup %814 }
  0xfa   :  { %v605_v2 = vsub.f32 0.0, %v573_v55  ;;  %v463_v42 = vadd.f32 0.2548296, %v447_v21  ;;  %v455_v15 = vmul.f32 %v1071_v44, %v439_v24  ;;  %v422_v28 = vmul.f32 %v1088_v19, %v406_v25  ;;  %v1129_v56 = vpop.eup %816 }
  0xfb   :  { %v613_v22 = vsub.f32 0.0, %v581_v8  ;;  %v572_v36 = vsub.f32 1.0, %v556_v13  ;;  %v564_v37 = vmul.f32 %v1069_v39, %v484_v17  ;;  %v430_v43 = vadd.f32 -0.28449672, %v414_v49 }
  0xfc   :  { %v621_v30 = vsel %vm589_vm1, %v605_v2, %v573_v55  ;;  %v479_v27 = vmul.f32 %v1062_v23, %v463_v42  ;;  %v471_v39 = vadd.f32 0.2548296, %v455_v15  ;;  %v438_v12 = vadd.f32 -0.28449672, %v422_v28 }
  0xfd   :  { %v637_v32 = vadd.f32 1.0, %v621_v30  ;;  %v629_v62 = vsel %vm597_vm2, %v613_v22, %v581_v8  ;;  %v604_v50 = vsub.f32 0.0, %v572_v36  ;;  %v580_v38 = vsub.f32 1.0, %v564_v37 }
  0xfe   :  { %v645_v48 = vadd.f32 1.0, %v629_v62  ;;  %v446_v55 = vmul.f32 %v1075_v54, %v430_v43  ;;  %v559_v53 = vmul.f32 %v1080_v63, %v479_v27  ;;  %v487_v23 = vmul.f32 %v1071_v44, %v471_v39 }
  0xff   :  { %v653_v52 = vmul.f32 %v637_v32, %v993_v61  ;;  %v620_v5 = vsel %vm588_vm3, %v604_v50, %v572_v36  ;;  %v612_v8 = vsub.f32 0.0, %v580_v38  ;;  %v353_v17 = vmul.f32 1.0614054, %v1114_v35 }
 0x100   :  { %v661_v4 = vmul.f32 %v645_v48, %v996_v1  ;;  %v636_v10 = vadd.f32 1.0, %v620_v5  ;;  %v462_v61 = vadd.f32 0.2548296, %v446_v55  ;;  %v575_v13 = vsub.f32 1.0, %v559_v53  ;;  %v756_v5 = vpop.f32.mrf.mxu0 }
 0x101   :  { %669 = vst [vmem:[#allocation2 + $0x8] sm:$0xff] %v653_v52  ;;  %v628_v2 = vsel %vm596_vm4, %v612_v8, %v580_v38  ;;  %v361_v1 = vmul.f32 1.0614054, %v1129_v56  ;;  %v567_v63 = vmul.f32 %v1084_v11, %v487_v23  ;;  %v454_v44 = vmul.f32 %v1088_v19, %v438_v12 }
 0x102   :  { %677 = vst [vmem:[#allocation2 + $0x48] sm:$0xff] %v661_v4  ;;  %v652_v33 = vmul.f32 %v636_v10, %v1003_v7  ;;  %v644_v21 = vadd.f32 1.0, %v628_v2  ;;  %v478_v22 = vmul.f32 %v1075_v54, %v462_v61  ;;  %v607_v24 = vsub.f32 0.0, %v575_v13 }
 0x103   :  { %v369_v49 = vadd.f32 -1.4531521, %v353_v17  ;;  %v377_v25 = vadd.f32 -1.4531521, %v361_v1  ;;  %v583_v30 = vsub.f32 1.0, %v567_v63  ;;  %vm590_vm7 = vcmp.lt.f32.partialorder %v1001_v6, 0.0 }
 0x104   :  { %668 = vst [vmem:[#allocation2] sm:$0xff] %v652_v33  ;;  %v660_v34 = vmul.f32 %v644_v21, %v1013_v18  ;;  %v558_v36 = vmul.f32 %v1093_v26, %v478_v22  ;;  %v550_v37 = vmul.f32 1.442695, %v521_v58  ;;  %v623_v7 = vsel %vm591_vm5, %v607_v24, %v575_v13  ;;  %v768_v24 = vpop.f32.mrf.mxu1 }
 0x105   :  { %v470_v11 = vadd.f32 0.2548296, %v454_v44  ;;  %v385_v54 = vmul.f32 %v1114_v35, %v369_v49  ;;  %v393_v42 = vmul.f32 %v1129_v56, %v377_v25  ;;  %v639_v32 = vadd.f32 1.0, %v623_v7 }
 0x106   :  { %676 = vst [vmem:[#allocation2 + $0x40] sm:$0xff] %v660_v34  ;;  %v615_v62 = vsub.f32 0.0, %v583_v30  ;;  %v574_v15 = vsub.f32 1.0, %v558_v36  ;;  %818 = vpow2.f32 %v550_v37  ;;  %v238_v3 = vmul.f32 0.5, %v991_v60 }
 0x107   :  { %v486_v18 = vmul.f32 %v1088_v19, %v470_v11  ;;  %v401_v26 = vadd.f32 1.4214138, %v385_v54  ;;  %v409_v29 = vadd.f32 1.4214138, %v393_v42  ;;  %v655_v58 = vmul.f32 %v639_v32, %v1024_v40 }
 0x108   :  { %v631_v57 = vsel %vm599_vm6, %v615_v62, %v583_v30  ;;  %v606_v43 = vsub.f32 0.0, %v574_v15  ;;  %v1161_v19 = vmul.f32 0.70710677, %v1049_v0  ;;  %v1164_v40 = vmul.f32 0.70710677, %v1056_v14 }
 0x109   :  { %v647_v48 = vadd.f32 1.0, %v631_v57  ;;  %v566_v50 = vmul.f32 %v1098_v41, %v486_v18  ;;  %v417_v38 = vmul.f32 %v1114_v35, %v401_v26  ;;  %v425_v27 = vmul.f32 %v1129_v56, %v409_v29  ;;  %671 = vst [vmem:[#allocation2 + $0x18] sm:$0xff] %v655_v58  ;;  %v227_v26 = vpop.f32.mrf.mxu1 }
 0x10a   :  { %v622_v52 = vsel %vm590_vm7, %v606_v43, %v574_v15  ;;  %v272_v4 = vand.u32 2147483647, %v1161_v19  ;;  %v280_v10 = vand.u32 2147483647, %v1164_v40  ;;  %vm598_vm8 = vcmp.lt.f32.partialorder %v1011_v16, 0.0  ;;  %v187_v16 = vpop.f32.mrf.mxu0 }
 0x10b   :  { %v663_v6 = vmul.f32 %v647_v48, %v1035_v51  ;;  %v638_v39 = vadd.f32 1.0, %v622_v52  ;;  %v582_v55 = vsub.f32 1.0, %v566_v50  ;;  %v433_v28 = vadd.f32 -0.28449672, %v417_v38 }
 0x10c   :  { %v441_v41 = vadd.f32 -0.28449672, %v425_v27  ;;  %v288_v61 = vmul.f32 0.3275911, %v272_v4  ;;  %v296_v2 = vmul.f32 0.3275911, %v280_v10  ;;  %v1173_v13 = vadd.f32 %v756_v5, %v968_v20 }
 0x10d   :  { %679 = vst [vmem:[#allocation2 + $0x58] sm:$0xff] %v663_v6  ;;  %v654_v8 = vmul.f32 %v638_v39, %v238_v3  ;;  %v614_v53 = vsub.f32 0.0, %v582_v55  ;;  %v449_v60 = vmul.f32 %v1114_v35, %v433_v28  ;;  %v246_v17 = vmul.f32 0.5, %v1007_v9 }
 0x10e   :  { %v457_v23 = vmul.f32 %v1129_v56, %v441_v41  ;;  %v304_v21 = vadd.f32 1.0, %v288_v61  ;;  %v312_v22 = vadd.f32 1.0, %v296_v2  ;;  %v1180_v30 = vmul.f32 0.70710677, %v1173_v13 }
 0x10f   :  { %670 = vst [vmem:[#allocation2 + $0x10] sm:$0xff] %v654_v8  ;;  %v630_v51 = vsel %vm598_vm8, %v614_v53, %v582_v55  ;;  %v465_v12 = vadd.f32 0.2548296, %v449_v60  ;;  %v1183_v36 = vadd.f32 %v768_v24, %v968_v20  ;;  %vm593_vm9 = vcmp.lt.f32.partialorder %v1028_v46, 0.0 }
 0x110   :  { %v646_v1 = vadd.f32 1.0, %v630_v51  ;;  %v473_v33 = vadd.f32 0.2548296, %v457_v23  ;;  %820 = vrcp.f32 %v304_v21  ;;  %v275_v7 = vand.u32 2147483647, %v1180_v30 }
 0x111   :  { %v481_v63 = vmul.f32 %v1114_v35, %v465_v12  ;;  %822 = vrcp.f32 %v312_v22  ;;  %v1186_v35 = vadd.f32 %v968_v20, %v187_v16  ;;  %vm601_vm10 = vcmp.lt.f32.partialorder %v1046_v59, 0.0 }
 0x112   :  { %v662_v44 = vmul.f32 %v646_v1, %v246_v17  ;;  %v489_v49 = vmul.f32 %v1129_v56, %v473_v33  ;;  %v241_v56 = vmul.f32 0.5, %v1017_v31  ;;  %v291_v42 = vmul.f32 0.3275911, %v275_v7 }
 0x113   :  { %v819_v25 = vpop.eup %818  ;;  %v561_v34 = vmul.f32 %v1123_v45, %v481_v63  ;;  %v1191_v45 = vmul.f32 0.70710677, %v1183_v36  ;;  %v1195_v32 = vmul.f32 0.70710677, %v1186_v35  ;;  %v496_v15 = vmul.f32 %v272_v4, %v272_v4 }
 0x114   :  { %678 = vst [vmem:[#allocation2 + $0x50] sm:$0xff] %v662_v44  ;;  %v569_v9 = vmul.f32 %v819_v25, %v489_v49  ;;  %v504_v31 = vmul.f32 %v280_v10, %v280_v10  ;;  %v307_v58 = vadd.f32 1.0, %v291_v42  ;;  %v249_v46 = vmul.f32 0.5, %v1031_v47 }
 0x115   :  { %v577_v37 = vsub.f32 1.0, %v561_v34  ;;  %v283_v18 = vand.u32 2147483647, %v1191_v45  ;;  %v274_v57 = vand.u32 2147483647, %v1195_v32  ;;  %v1202_v59 = vadd.f32 %v968_v20, %v227_v26 }
 0x116   :  { %v585_v11 = vsub.f32 1.0, %v569_v9  ;;  %824 = vrcp.f32 %v307_v58  ;;  %v512_v52 = vsub.f32 0.0, %v496_v15  ;;  %v520_v55 = vsub.f32 0.0, %v504_v31 }
 0x117   :  { %v609_v54 = vsub.f32 0.0, %v577_v37  ;;  %v299_v50 = vmul.f32 0.3275911, %v283_v18  ;;  %v290_v27 = vmul.f32 0.3275911, %v274_v57  ;;  %v499_v53 = vmul.f32 %v275_v7, %v275_v7 }
 0x118   :  { %v617_v62 = vsub.f32 0.0, %v585_v11  ;;  %v1205_v47 = vmul.f32 0.70710677, %v1202_v59  ;;  %v532_v8 = vmul.f32 1.442695, %v512_v52  ;;  %v507_v17 = vmul.f32 %v283_v18, %v283_v18 }
 0x119   :  { %v625_v29 = vsel %vm593_vm9, %v609_v54, %v577_v37  ;;  %v315_v6 = vadd.f32 1.0, %v299_v50  ;;  %v306_v28 = vadd.f32 1.0, %v290_v27  ;;  %v548_v60 = vmul.f32 1.442695, %v520_v55 }
 0x11a   :  { %v641_v43 = vadd.f32 1.0, %v625_v29  ;;  %v633_v48 = vsel %vm601_vm10, %v617_v62, %v585_v11  ;;  %v282_v10 = vand.u32 2147483647, %v1205_v47  ;;  %v515_v2 = vsub.f32 0.0, %v499_v53 }
 0x11b   :  { %v649_v38 = vadd.f32 1.0, %v633_v48  ;;  %826 = vrcp.f32 %v315_v6  ;;  %v498_v33 = vmul.f32 %v274_v57, %v274_v57  ;;  %v523_v49 = vsub.f32 0.0, %v507_v17 }
 0x11c   :  { %v657_v3 = vmul.f32 %v641_v43, %v241_v56  ;;  %828 = vrcp.f32 %v306_v28  ;;  %v298_v51 = vmul.f32 0.3275911, %v282_v10  ;;  %v538_v44 = vmul.f32 1.442695, %v515_v2 }
 0x11d   :  { %v665_v39 = vmul.f32 %v649_v38, %v249_v46  ;;  %v821_v41 = vpop.eup %820  ;;  %830 = vpow2.f32 %v532_v8  ;;  %v514_v9 = vsub.f32 0.0, %v498_v33  ;;  %v554_v15 = vmul.f32 1.442695, %v523_v49 }
 0x11e   :  { %673 = vst [vmem:[#allocation2 + $0x28] sm:$0xff] %v657_v3  ;;  %v823_v4 = vpop.eup %822  ;;  %v352_v5 = vmul.f32 1.0614054, %v821_v41  ;;  %832 = vpow2.f32 %v548_v60  ;;  %v314_v21 = vadd.f32 1.0, %v298_v51  ;;  %v506_v43 = vmul.f32 %v282_v10, %v282_v10 }
 0x11f   :  { %681 = vst [vmem:[#allocation2 + $0x68] sm:$0xff] %v665_v39  ;;  %v360_v20 = vmul.f32 1.0614054, %v823_v4  ;;  %v536_v31 = vmul.f32 1.442695, %v514_v9  ;;  %vm592_vm11 = vcmp.lt.f32.partialorder %v1161_v19, 0.0 }
 0x120   :  { %v368_v23 = vadd.f32 -1.4531521, %v352_v5  ;;  %834 = vrcp.f32 %v314_v21  ;;  %v522_v8 = vsub.f32 0.0, %v506_v43  ;;  %vm600_vm12 = vcmp.lt.f32.partialorder %v1164_v40, 0.0 }
 0x121   :  { %v376_v61 = vadd.f32 -1.4531521, %v360_v20  ;;  %836 = vpow2.f32 %v538_v44  ;;  %vm595_vm13 = vcmp.lt.f32.partialorder %v1180_v30, 0.0  ;;  %vm603_vm14 = vcmp.lt.f32.partialorder %v1191_v45, 0.0 }
 0x122   :  { %v384_v12 = vmul.f32 %v821_v41, %v368_v23  ;;  %838 = vpow2.f32 %v554_v15  ;;  %v552_v21 = vmul.f32 1.442695, %v522_v8  ;;  %vm594_vm15 = vcmp.lt.f32.partialorder %v1195_v32, 0.0 }
 0x123   :  { %v392_v1 = vmul.f32 %v823_v4, %v376_v61  ;;  %v1208_v24 = vpop.eup %824  ;;  %840 = vpow2.f32 %v536_v31  ;;  %v251_v30 = vmul.f32 0.5, %v1183_v36  ;;  %vm602_vm0 = vcmp.lt.f32.partialorder %v1205_v47, 0.0 }
 0x124   :  { %v400_v63 = vadd.f32 1.4214138, %v384_v12  ;;  %v355_v34 = vmul.f32 1.0614054, %v1208_v24  ;;  %842 = vpow2.f32 %v552_v21  ;;  %v250_v36 = vmul.f32 0.5, %v1202_v59 }
 0x125   :  { %v408_v22 = vadd.f32 1.4214138, %v392_v1  ;;  %v248_v1 = vmul.f32 0.5, %v1056_v14 }
 0x126   :  { %v416_v16 = vmul.f32 %v821_v41, %v400_v63  ;;  %v371_v11 = vadd.f32 -1.4531521, %v355_v34 }
 0x127   :  { %v424_v25 = vmul.f32 %v823_v4, %v408_v22 }
 0x128   :  { %v432_v37 = vadd.f32 -0.28449672, %v416_v16  ;;  %v1211_v7 = vpop.eup %826  ;;  %v387_v26 = vmul.f32 %v1208_v24, %v371_v11 }
 0x129   :  { %v440_v56 = vadd.f32 -0.28449672, %v424_v25  ;;  %v1213_v54 = vpop.eup %828  ;;  %v363_v62 = vmul.f32 1.0614054, %v1211_v7 }
 0x12a   :  { %v448_v42 = vmul.f32 %v821_v41, %v432_v37  ;;  %v354_v29 = vmul.f32 1.0614054, %v1213_v54  ;;  %v403_v48 = vadd.f32 1.4214138, %v387_v26  ;;  %v831_v3 = vpop.eup %830 }
 0x12b   :  { %v456_v18 = vmul.f32 %v823_v4, %v440_v56  ;;  %v379_v57 = vadd.f32 -1.4531521, %v363_v62  ;;  %v833_v55 = vpop.eup %832 }
 0x12c   :  { %v464_v58 = vadd.f32 0.2548296, %v448_v42  ;;  %v370_v50 = vadd.f32 -1.4531521, %v354_v29  ;;  %v419_v6 = vmul.f32 %v1208_v24, %v403_v48 }
 0x12d   :  { %v472_v46 = vadd.f32 0.2548296, %v456_v18  ;;  %v395_v27 = vmul.f32 %v1211_v7, %v379_v57  ;;  %v1221_v10 = vpop.eup %834 }
 0x12e   :  { %v480_v38 = vmul.f32 %v821_v41, %v464_v58  ;;  %v386_v39 = vmul.f32 %v1213_v54, %v370_v50  ;;  %v435_v20 = vadd.f32 -0.28449672, %v419_v6  ;;  %v240_v41 = vmul.f32 0.5, %v1049_v0  ;;  %v837_v25 = vpop.eup %836 }
 0x12f   :  { %v488_v52 = vmul.f32 %v823_v4, %v472_v46  ;;  %v411_v5 = vadd.f32 1.4214138, %v395_v27  ;;  %v362_v2 = vmul.f32 1.0614054, %v1221_v10  ;;  %v839_v29 = vpop.eup %838 }
 0x130   :  { %v560_v28 = vmul.f32 %v831_v3, %v480_v38  ;;  %v402_v60 = vadd.f32 1.4214138, %v386_v39  ;;  %v451_v51 = vmul.f32 %v1208_v24, %v435_v20  ;;  %v242_v20 = vmul.f32 0.5, %v1186_v35 }
 0x131   :  { %v568_v53 = vmul.f32 %v833_v55, %v488_v52  ;;  %v427_v61 = vmul.f32 %v1211_v7, %v411_v5  ;;  %v378_v49 = vadd.f32 -1.4531521, %v362_v2 }
 0x132   :  { %v576_v23 = vsub.f32 1.0, %v560_v28  ;;  %v418_v12 = vmul.f32 %v1213_v54, %v402_v60  ;;  %v467_v22 = vadd.f32 0.2548296, %v451_v51 }
 0x133   :  { %v584_v4 = vsub.f32 1.0, %v568_v53  ;;  %v443_v33 = vadd.f32 -0.28449672, %v427_v61  ;;  %v394_v19 = vmul.f32 %v1221_v10, %v378_v49 }
 0x134   :  { %v608_v17 = vsub.f32 0.0, %v576_v23  ;;  %v434_v0 = vadd.f32 -0.28449672, %v418_v12  ;;  %v483_v37 = vmul.f32 %v1208_v24, %v467_v22  ;;  %v841_v24 = vpop.eup %840 }
 0x135   :  { %v616_v63 = vsub.f32 0.0, %v584_v4  ;;  %v459_v44 = vmul.f32 %v1211_v7, %v443_v33  ;;  %v410_v26 = vadd.f32 1.4214138, %v394_v19 }
 0x136   :  { %v624_v16 = vsel %vm592_vm11, %v608_v17, %v576_v23  ;;  %v450_v14 = vmul.f32 %v1213_v54, %v434_v0  ;;  %v563_v62 = vmul.f32 %v837_v25, %v483_v37 }
 0x137   :  { %v640_v34 = vadd.f32 1.0, %v624_v16  ;;  %v632_v9 = vsel %vm600_vm12, %v616_v63, %v584_v4  ;;  %v475_v11 = vadd.f32 0.2548296, %v459_v44  ;;  %v426_v43 = vmul.f32 %v1221_v10, %v410_v26 }
 0x138   :  { %v648_v56 = vadd.f32 1.0, %v632_v9  ;;  %v466_v15 = vadd.f32 0.2548296, %v450_v14  ;;  %v579_v31 = vsub.f32 1.0, %v563_v62 }
 0x139   :  { %v656_v42 = vmul.f32 %v640_v34, %v240_v41  ;;  %v491_v40 = vmul.f32 %v1211_v7, %v475_v11  ;;  %v442_v38 = vadd.f32 -0.28449672, %v426_v43  ;;  %v243_v7 = vmul.f32 0.5, %v1173_v13  ;;  %v843_v41 = vpop.eup %842 }
 0x13a   :  { %v664_v18 = vmul.f32 %v648_v56, %v248_v1  ;;  %v482_v58 = vmul.f32 %v1213_v54, %v466_v15  ;;  %v611_v46 = vsub.f32 0.0, %v579_v31 }
 0x13b   :  { %672 = vst [vmem:[#allocation2 + $0x20] sm:$0xff] %v656_v42  ;;  %v571_v57 = vmul.f32 %v839_v29, %v491_v40  ;;  %v458_v39 = vmul.f32 %v1221_v10, %v442_v38 }
 0x13c   :  { %680 = vst [vmem:[#allocation2 + $0x60] sm:$0xff] %v664_v18  ;;  %v562_v48 = vmul.f32 %v841_v24, %v482_v58  ;;  %v627_v27 = vsel %vm595_vm13, %v611_v46, %v579_v31 }
 0x13d   :  { %v587_v50 = vsub.f32 1.0, %v571_v57  ;;  %v643_v52 = vadd.f32 1.0, %v627_v27  ;;  %v474_v5 = vadd.f32 0.2548296, %v458_v39 }
 0x13e   :  { %v578_v3 = vsub.f32 1.0, %v562_v48 }
 0x13f   :  { %v619_v6 = vsub.f32 0.0, %v587_v50  ;;  %v659_v55 = vmul.f32 %v643_v52, %v243_v7  ;;  %v490_v60 = vmul.f32 %v1221_v10, %v474_v5 }
 0x140   :  { %v610_v54 = vsub.f32 0.0, %v578_v3 }
 0x141   :  { %v635_v28 = vsel %vm603_vm14, %v619_v6, %v587_v50  ;;  %675 = vst [vmem:[#allocation2 + $0x38] sm:$0xff] %v659_v55  ;;  %v570_v45 = vmul.f32 %v843_v41, %v490_v60 }
 0x142   :  { %v651_v8 = vadd.f32 1.0, %v635_v28  ;;  %v626_v53 = vsel %vm594_vm15, %v610_v54, %v578_v3 }
 0x143   :  { %v642_v13 = vadd.f32 1.0, %v626_v53  ;;  %v586_v4 = vsub.f32 1.0, %v570_v45 }
 0x144   :  { %v667_v23 = vmul.f32 %v651_v8, %v251_v30 }
 0x145   :  { %v658_v61 = vmul.f32 %v642_v13, %v242_v20  ;;  %v618_v51 = vsub.f32 0.0, %v586_v4 }
 0x146   :  { %683 = vst [vmem:[#allocation2 + $0x78] sm:$0xff] %v667_v23 }
 0x147   :  { %674 = vst [vmem:[#allocation2 + $0x30] sm:$0xff] %v658_v61  ;;  %v634_v32 = vsel %vm602_vm0, %v618_v51, %v586_v4 }
 0x148   :  { %v650_v12 = vadd.f32 1.0, %v634_v32 }
 0x14a   :  { %v666_v35 = vmul.f32 %v650_v12, %v250_v36 }
 0x14c   :  { %682 = vst [vmem:[#allocation2 + $0x70] sm:$0xff] %v666_v35 }
 0x14d   :  { %855 = shalt.err (!%p852_p4)
}
 0x14e   :  { %s867_s26 = smov 128   ;;  %s868_s27 = smov 8  }
 0x14f   :  { %695 = dma.vmem_to_hbm [thread:$0]  %s690_s2, 2048, %s1254_s3, [#allocation3], %s867_s26, %s867_s26, %s868_s27  }
 0x150   :  { %864 = dma.done.wait [#allocation3], 2048  }
 0x151   :  { %865 = vsyncadd [#allocation3], 4294965248 }
 0x152   :  { %699 = vsyncpa [#allocation3], 1 }

</bundles_post_ra>
